<compile_context>
chip_gen: v7x
topology: tpu7x:2x2x1
jax: 0.10.0
libtpu: 0.0.40
codegen_flags: <defaults>
</compile_context>

<pallas_src>
import functools

import jax
import jax.numpy as jnp
from jax.experimental import pallas as pl
from jax.experimental.pallas import tpu as pltpu


# ---------------------------------------------------------------------------
# pltpu.roll direction probe (run once, outside jit).  The kernel only needs
# "fetch from d lanes above"; probing makes the code robust to the rotation
# convention of the roll primitive.
# ---------------------------------------------------------------------------

_ROLL_MATCHES_NUMPY = None
_VMEM = pl.BlockSpec(memory_space=pltpu.MemorySpace.VMEM)


def _roll_probe_kernel(x_ref, o_ref):
    o_ref[...] = pltpu.roll(x_ref[...], shift=1, axis=1)


def _roll_matches_numpy():
    """True iff pltpu.roll(x, s, axis)[..., i] == x[..., (i - s) % n] (np.roll)."""
    global _ROLL_MATCHES_NUMPY
    if _ROLL_MATCHES_NUMPY is None:
        x = jnp.tile(jnp.arange(128, dtype=jnp.float32), (8, 1))
        out = pl.pallas_call(
            _roll_probe_kernel,
            out_shape=jax.ShapeDtypeStruct((8, 128), jnp.float32),
            in_specs=[_VMEM],
            out_specs=_VMEM,
        )(x)
        _ROLL_MATCHES_NUMPY = bool(jax.device_get(out[0, 0]) == 127.0)
    return _ROLL_MATCHES_NUMPY


def _fetch_up(x, d, numpy_roll):
    """Return y with y[..., m] = x[..., (m + d) % n]  (n = lane extent)."""
    if d == 0:
        return x
    n = x.shape[-1]
    return pltpu.roll(x, shift=(n - d) if numpy_roll else d, axis=1)


# ---------------------------------------------------------------------------
# The fused kernel (one grid step == TB lane-stacked images).
# ---------------------------------------------------------------------------

def _lenet_kernel(x_ref, w1_ref, b1_ref, w2_ref, b2_ref, s1_ref, wg1_ref,
                  bf1_ref, wf2_ref, bf2_ref, wf3_ref, bf3_ref,
                  o_ref, m2_scr, *, numpy_roll, tb):
    f32 = jnp.float32
    xv = x_ref[0]                                        # [3, tb*1024]

    # ---- conv1 (3->6, 5x5 valid) + ReLU on the 32-wide grid, all tb images --
    acc1 = jnp.zeros((6, tb * 1024), f32)
    for kh in range(5):
        for kw in range(5):
            win = _fetch_up(xv, kh * 32 + kw, numpy_roll)          # [3, tb*1024]
            acc1 = acc1 + jnp.dot(w1_ref[kh * 5 + kw], win,
                                  preferred_element_type=f32)
    y1 = jnp.maximum(acc1 + b1_ref[...], 0.0)            # [6, tb*1024]

    # ---- maxpool1 (2x2/2): window max in place, then per-image stride-2 -----
    # ---- compaction 28x28 -> 14x14 (local lane 14*r + c). -------------------
    t1 = jnp.maximum(y1, _fetch_up(y1, 1, numpy_roll))   # +1 column
    t1 = jnp.maximum(t1, _fetch_up(t1, 32, numpy_roll))  # +1 row
    a1 = jnp.concatenate(
        [jnp.dot(t1[:, b * 1024:b * 1024 + 896], s1_ref[...],
                 preferred_element_type=f32) for b in range(tb)],
        axis=1)                                          # [6, tb*256] (196 valid/img)

    # ---- conv2 (6->16, 5x5 valid) + ReLU on the 14-wide grid ----------------
    acc2 = jnp.zeros((16, tb * 256), f32)
    for kh in range(5):
        for kw in range(5):
            win = _fetch_up(a1, kh * 14 + kw, numpy_roll)          # [6, tb*256]
            acc2 = acc2 + jnp.dot(w2_ref[kh * 5 + kw], win,
                                  preferred_element_type=f32)
    y2 = jnp.maximum(acc2 + b2_ref[...], 0.0)            # [16, tb*256]

    # ---- maxpool2 (2x2/2): window maxima stay at local lanes 28*p + 2*q -----
    t2 = jnp.maximum(y2, _fetch_up(y2, 1, numpy_roll))
    t2 = jnp.maximum(t2, _fetch_up(t2, 14, numpy_roll))
    m2_scr[...] = t2                                     # [16, tb*256]

    # ---- fc1 (16*5*5 -> 120), pool2 gather folded into weights (K=128) ------
    h1_rows = []
    for b in range(tb):
        h = bf1_ref[...]                                 # [1, 128]
        for c in range(16):
            h = h + jnp.dot(m2_scr[pl.ds(c, 1), pl.ds(b * 256, 128)],
                            wg1_ref[c], preferred_element_type=f32)
        h1_rows.append(jnp.maximum(h, 0.0))              # [1, 128] (120 valid)
    h1 = jnp.concatenate(h1_rows, axis=0)                # [tb, 128]

    # ---- fc2 + ReLU, fc3, batched over the tb images ------------------------
    h2 = jnp.maximum(
        jnp.dot(h1, wf2_ref[...], preferred_element_type=f32) + bf2_ref[...],
        0.0)
    out = jnp.dot(h2, wf3_ref[...], preferred_element_type=f32) + bf3_ref[...]
    o_ref[0] = out.astype(o_ref.dtype)                   # [tb, 128]


# ---------------------------------------------------------------------------
# Host-side wrappers.
# ---------------------------------------------------------------------------

def init_params(key, dtype=jnp.float32):
    """Deterministic PyTorch-style (uniform +/- 1/sqrt(fan_in)) init."""
    def uni(k, shape, fan_in):
        bound = 1.0 / jnp.sqrt(jnp.asarray(fan_in, dtype))
        return jax.random.uniform(k, shape, dtype, minval=-bound, maxval=bound)

    keys = jax.random.split(key, 10)
    return {
        "conv1_w": uni(keys[0], (6, 3, 5, 5), 3 * 5 * 5),
        "conv1_b": uni(keys[1], (6,), 3 * 5 * 5),
        "conv2_w": uni(keys[2], (16, 6, 5, 5), 6 * 5 * 5),
        "conv2_b": uni(keys[3], (16,), 6 * 5 * 5),
        "fc1_w": uni(keys[4], (120, 400), 400),
        "fc1_b": uni(keys[5], (120,), 400),
        "fc2_w": uni(keys[6], (84, 120), 120),
        "fc2_b": uni(keys[7], (84,), 120),
        "fc3_w": uni(keys[8], (10, 84), 84),
        "fc3_b": uni(keys[9], (10,), 84),
    }


def prepare_params(params):
    """One-time re-layout of PyTorch-convention params into kernel layouts."""
    f32 = jnp.float32
    kp = {}

    # Conv weights: [OC, IC, KH, KW] -> [KH*KW, OC, IC] so each tap is a matrix.
    kp["w1"] = jnp.transpose(params["conv1_w"].astype(f32), (2, 3, 0, 1)).reshape(25, 6, 3)
    kp["b1"] = params["conv1_b"].astype(f32).reshape(6, 1)
    kp["w2"] = jnp.transpose(params["conv2_w"].astype(f32), (2, 3, 0, 1)).reshape(25, 16, 6)
    kp["b2"] = params["conv2_b"].astype(f32).reshape(16, 1)

    # Pool1 compaction: lane 64*ph + 2*pw -> lane 14*ph + pw (ph, pw < 14).
    # Only source lanes <= 858 are ever selected, so K is trimmed to 896.
    ph, pw = jnp.meshgrid(jnp.arange(14), jnp.arange(14), indexing="ij")
    src = (64 * ph + 2 * pw).reshape(-1)
    dst = (14 * ph + pw).reshape(-1)
    kp["s1"] = jnp.zeros((896, 256), f32).at[src, dst].set(1.0)

    # fc1 weights gathered onto the pool2 window-max layout (lane 28*ph + 2*pw,
    # all < 128 so K=128), output padded 120 -> 128.
    # wg1[c, 28*ph+2*pw, j] = fc1_w[j, c*25 + 5*ph + pw].
    fc1w = params["fc1_w"].astype(f32).reshape(120, 16, 5, 5)        # [j, c, ph, pw]
    ph2, pw2 = jnp.meshgrid(jnp.arange(5), jnp.arange(5), indexing="ij")
    lanes = (28 * ph2 + 2 * pw2).reshape(-1)                          # [25]
    src_w = jnp.transpose(fc1w, (1, 2, 3, 0)).reshape(16, 25, 120)    # [c, hw, j]
    kp["wg1"] = jnp.zeros((16, 128, 128), f32).at[:, lanes, :120].set(src_w)
    kp["bf1"] = jnp.zeros((1, 128), f32).at[0, :120].set(params["fc1_b"].astype(f32))

    # fc2 / fc3: pre-transposed to [IN, OUT], zero-padded to 128x128.
    kp["wf2"] = jnp.zeros((128, 128), f32).at[:120, :84].set(params["fc2_w"].astype(f32).T)
    kp["bf2"] = jnp.zeros((1, 128), f32).at[0, :84].set(params["fc2_b"].astype(f32))
    kp["wf3"] = jnp.zeros((128, 128), f32).at[:84, :10].set(params["fc3_w"].astype(f32).T)
    kp["bf3"] = jnp.zeros((1, 128), f32).at[0, :10].set(params["fc3_b"].astype(f32))
    return kp


def _flops_and_bytes(nb, tb):
    per_block = (25 * 2 * 6 * 3 * (tb * 1024)     # conv1 taps
                 + tb * 2 * 6 * 896 * 256          # pool1 compaction matmuls
                 + 25 * 2 * 16 * 6 * (tb * 256)    # conv2 taps
                 + tb * 16 * 2 * 128 * 128         # fc1 (gathered)
                 + 2 * tb * 2 * 128 * 128)         # fc2 + fc3
    w_bytes = 4 * (25 * 6 * 3 + 6 + 25 * 16 * 6 + 16 + 896 * 256
                   + 16 * 128 * 128 + 128 + 128 * 128 + 128 + 128 * 128 + 128)
    io_bytes = nb * tb * (3 * 1024 + 128) * 4
    return nb * per_block, io_bytes + w_bytes


def cifar_classifier_forward(kparams, x):
    """x: [N, 3, 32, 32] float32 (NCHW, like PyTorch) -> logits [N, 10]."""
    n, c, h, w = x.shape
    assert (c, h, w) == (3, 32, 32), "CIFARClassifier requires 3x32x32 inputs"

    tb = 1 if n == 1 else 2                      # images lane-stacked per grid step
    n_pad = ((n + tb - 1) // tb) * tb
    nb = n_pad // tb

    xf = x.astype(jnp.float32).reshape(n, 3, 1024)
    if n_pad != n:
        xf = jnp.concatenate(
            [xf, jnp.zeros((n_pad - n, 3, 1024), jnp.float32)], axis=0)
    # Layout plumbing: [nb, tb, 3, 1024] -> [nb, 3, tb*1024] (image-major lanes).
    xs = xf.reshape(nb, tb, 3, 1024).transpose(0, 2, 1, 3).reshape(nb, 3, tb * 1024)

    kernel = functools.partial(_lenet_kernel,
                               numpy_roll=_roll_matches_numpy(), tb=tb)
    flops, bytes_accessed = _flops_and_bytes(nb, tb)

    grid_spec = pltpu.PrefetchScalarGridSpec(
        num_scalar_prefetch=0,
        grid=(nb,),
        in_specs=[
            pl.BlockSpec((1, 3, tb * 1024), lambda i: (i, 0, 0)),   # images
            pl.BlockSpec((25, 6, 3), lambda i: (0, 0, 0)),          # conv1 W (per tap)
            pl.BlockSpec((6, 1), lambda i: (0, 0)),                 # conv1 b
            pl.BlockSpec((25, 16, 6), lambda i: (0, 0, 0)),         # conv2 W (per tap)
            pl.BlockSpec((16, 1), lambda i: (0, 0)),                # conv2 b
            pl.BlockSpec((896, 256), lambda i: (0, 0)),             # pool1 selection
            pl.BlockSpec((16, 128, 128), lambda i: (0, 0, 0)),      # fc1 gathered W
            pl.BlockSpec((1, 128), lambda i: (0, 0)),               # fc1 b (padded)
            pl.BlockSpec((128, 128), lambda i: (0, 0)),             # fc2 W (padded)
            pl.BlockSpec((1, 128), lambda i: (0, 0)),               # fc2 b (padded)
            pl.BlockSpec((128, 128), lambda i: (0, 0)),             # fc3 W (padded)
            pl.BlockSpec((1, 128), lambda i: (0, 0)),               # fc3 b (padded)
        ],
        out_specs=pl.BlockSpec((1, tb, 128), lambda i: (i, 0, 0)),
        scratch_shapes=[pltpu.VMEM((16, tb * 256), jnp.float32)],
    )

    out = pl.pallas_call(
        kernel,
        out_shape=jax.ShapeDtypeStruct((nb, tb, 128), jnp.float32),
        grid_spec=grid_spec,
        compiler_params=pltpu.CompilerParams(
            dimension_semantics=("parallel",),
            vmem_limit_bytes=32 * 1024 * 1024,
        ),
        cost_estimate=pl.CostEstimate(
            flops=flops, transcendentals=0, bytes_accessed=bytes_accessed),
    )(xs, kparams["w1"], kparams["b1"], kparams["w2"], kparams["b2"],
      kparams["s1"], kparams["wg1"], kparams["bf1"],
      kparams["wf2"], kparams["bf2"], kparams["wf3"], kparams["bf3"])

    # Padded logit lanes 10..127 are exactly zero; slice them off outside.
    return out.reshape(n_pad, 128)[:n, :10]


# ---------------------------------------------------------------------------
# Pure-JAX reference (mirrors the PyTorch module) for a correctness check.
# ---------------------------------------------------------------------------

def _reference_forward(params, x):
    dn = ("NCHW", "OIHW", "NCHW")
    y = jax.lax.conv_general_dilated(x, params["conv1_w"], (1, 1), "VALID",
                                     dimension_numbers=dn)
    y = jax.nn.relu(y + params["conv1_b"][None, :, None, None])
    y = jax.lax.reduce_window(y, -jnp.inf, jax.lax.max,
                              (1, 1, 2, 2), (1, 1, 2, 2), "VALID")
    y = jax.lax.conv_general_dilated(y, params["conv2_w"], (1, 1), "VALID",
                                     dimension_numbers=dn)
    y = jax.nn.relu(y + params["conv2_b"][None, :, None, None])
    y = jax.lax.reduce_window(y, -jnp.inf, jax.lax.max,
                              (1, 1, 2, 2), (1, 1, 2, 2), "VALID")
    y = y.reshape(y.shape[0], -1)                         # NCHW flatten == torch
    y = jax.nn.relu(y @ params["fc1_w"].T + params["fc1_b"])
    y = jax.nn.relu(y @ params["fc2_w"].T + params["fc2_b"])
    return y @ params["fc3_w"].T + params["fc3_b"]


if __name__ == "__main__":
    key = jax.random.PRNGKey(0)
    k_x, k_p = jax.random.split(key)
    # Input spatial size is fixed to 32x32 by fc1 (16*5*5 = 400 features).
    x = jax.random.normal(k_x, (2, 3, 32, 32), dtype=jnp.float32)
    params = init_params(k_p)

    _roll_matches_numpy()                       # resolve roll convention once
    kparams = jax.jit(prepare_params)(params)   # one-time weight re-layout
    fwd = jax.jit(cifar_classifier_forward)

    out = jax.block_until_ready(fwd(kparams, x))
    assert out.shape == (2, 10), out.shape

    ref = jax.block_until_ready(_reference_forward(params, x))
    err = float(jnp.max(jnp.abs(out - ref)))
    assert err < 5e-2, f"kernel/reference mismatch, max abs err = {err}"
    print("KERNEL_OK")
</pallas_src>

<mosaic_0001>
module attributes {stable_mosaic.version = 11 : i64} {
  func.func @_roll_probe_kernel(%arg0: memref<8x128xf32, #tpu.memory_space<vmem>>, %arg1: memref<8x128xf32, #tpu.memory_space<vmem>>) attributes {dimension_semantics = [], scalar_prefetch = 0 : i64, scratch_operands = 0 : i64, tpu.core_type = #tpu.core_type<tc>} {
    %c0 = arith.constant 0 : index
    %c0_0 = arith.constant 0 : index
    %0 = vector.load %arg0[%c0, %c0_0] : memref<8x128xf32, #tpu.memory_space<vmem>>, vector<8x128xf32>
    %c1_i32 = arith.constant 1 : i32
    %1 = tpu.dynamic_rotate %0 by %c1_i32 dim 1 : vector<8x128xf32>, i32 -> vector<8x128xf32>
    %c0_1 = arith.constant 0 : index
    %c0_2 = arith.constant 0 : index
    %2 = vector.load %arg1[%c0_1, %c0_2] : memref<8x128xf32, #tpu.memory_space<vmem>>, vector<8x128xf32>
    tpu.vector_store %arg1[%c0_1, %c0_2], %1 {strides = array<i32>} : memref<8x128xf32, #tpu.memory_space<vmem>>, vector<8x128xf32>,
    return
  }
}

</mosaic_0001>

<bundles_post_ra>
// kernel: tpu_custom_call.1
= control target key start
LH: loop header
LB: loop body
LE: loop exit
PB: predicated region body
PF: predicated region fallthrough
CT: control target
= control target key end

     0   :  { %6 = vsyncpa [#allocation3], 0  ;;  %s128_s0 = inlined_call_operand.hbm [shape: f32[8,128], index: 0, kind: input, shape index: {}]   ;;  %s129_s1 = inlined_call_operand.hbm [shape: f32[8,128], index: 1, kind: output, shape index: {}]  }
   0x1   :  { %7 = vsyncpa [#allocation4], 0  ;;  %s91_s6 = smov [#allocation2]   ;;  %s43_s10 = scalar_lea.hbm %s128_s0, 128 }
   0x2   :  { %s14_s7 = sshll.u32 %s91_s6, 4  ;;  %p44_p0 = scmp.ne.s32.totalorder %s128_s0, %s43_s10  ;;  %s15_s7 = int_to_ptr.vmem [resolvable:$true] %s14_s7 }
   0x3   :  { %p47_p1 = scmp.lt.u32.totalorder %s43_s10, %s128_s0 }
   0x5   :  { %p49_p2 = pnand %p47_p1, %p44_p0 }
   0x7   :  { %52 = shalt.err (!%p49_p2)
}
   0x8   :  { %s53_s15 = scalar_lea.vmem %s15_s7, 128  ;;  %p58_p4 = scmp.lt.s32.totalorder %s15_s7, %s15_s7 }
   0x9   :  { %p54_p3 = scmp.ne.s32.totalorder %s15_s7, %s53_s15  ;;  %p59_p5 = scmp.lt.s32.totalorder %s53_s15, %s53_s15 }
   0xb   :  { %p60_p6 = por %p59_p5, %p58_p4 }
   0xd   :  { %p61_p7 = pnand %p60_p6, %p54_p3 }
   0xf   :  { %64 = shalt.err (!%p61_p7)
}
  0x10   :  { %17 = dma.hbm_to_vmem [thread:$0]  %s128_s0, 128, %s15_s7, [#allocation3]  }
  0x11   :  { %87 = dma.done.wait [#allocation3], 128  }
  0x12   :  { %88 = vsyncadd [#allocation3], 4294967168  ;;  %v21_v0 = vld [vmem:[#allocation2] sm:$0xff]  ;;  %s92_s18 = smov 1   ;;  %s93_s19 = smov [#allocation5]  }
  0x13   :  { %22 = vrot.lane.b32.xlu0 %v21_v0, %s92_s18  ;;  %s31_s20 = sshll.u32 %s93_s19, 4  ;;  %s32_s20 = int_to_ptr.vmem [resolvable:$true] %s31_s20 }
  0x14   :  { %s65_s21 = scalar_lea.vmem %s32_s20, 128  ;;  %p70_p9 = scmp.lt.s32.totalorder %s32_s20, %s32_s20 }
  0x15   :  { %p66_p8 = scmp.ne.s32.totalorder %s32_s20, %s65_s21  ;;  %p71_p10 = scmp.lt.s32.totalorder %s65_s21, %s65_s21 }
  0x17   :  { %p72_p11 = por %p71_p10, %p70_p9 }
  0x19   :  { %p73_p12 = pnand %p72_p11, %p66_p8 }
  0x85   :  { %v23_v1 = vpop.permute.xlu0 %22 }
  0x86   :  { %24 = vst [vmem:[#allocation5] sm:$0xff] %v23_v1 }
  0x87   :  { %76 = shalt.err (!%p73_p12)
}
  0x88   :  { %s77_s0 = scalar_lea.hbm %s129_s1, 128 }
  0x89   :  { %p78_p13 = scmp.ne.s32.totalorder %s129_s1, %s77_s0  ;;  %p81_p0 = scmp.lt.u32.totalorder %s77_s0, %s129_s1 }
  0x8b   :  { %p83_p1 = pnand %p81_p0, %p78_p13 }
  0x8d   :  { %86 = shalt.err (!%p83_p1)
}
  0x8e   :  { %34 = dma.vmem_to_hbm [thread:$0]  %s32_s20, 128, %s129_s1, [#allocation4]  }
  0x8f   :  { %89 = dma.done.wait [#allocation4], 128  }
  0x90   :  { %90 = vsyncadd [#allocation4], 4294967168 }
  0x91   :  { %38 = vsyncpa [#allocation3], 1 }
  0x92   :  { %39 = vsyncpa [#allocation4], 1 }

</bundles_post_ra>
